<compile_context>
chip_gen: v7x
topology: tpu7x:2x2x1
jax: 0.10.0
libtpu: 0.0.40
codegen_flags: <defaults>
</compile_context>

<pallas_src>
import functools

import jax
import jax.numpy as jnp
from jax import lax
from jax.experimental import pallas as pl
from jax.experimental.pallas import tpu as pltpu


def _self_attention_kernel(xq_ref, xkv_ref, wq_ref, bq_ref, wkv_ref, bkv_ref,
                           o_ref, *, scale, dpad):
    cdt = xq_ref.dtype                        # MXU operand dtype (f32 or bf16)

    xq = xq_ref[0]                            # (tq, dim)  query-row tile
    xkv = xkv_ref[0]                          # (N,  dim)  full sequence

    # Q projection for this query tile; fold the softmax scale into q.
    q = jnp.dot(xq, wq_ref[...], preferred_element_type=jnp.float32)
    q = (q + bq_ref[...].astype(jnp.float32)) * scale           # (tq, dpad) f32

    # Fused K|V projection for the whole sequence (single wide MXU matmul).
    kv = jnp.dot(xkv, wkv_ref[...], preferred_element_type=jnp.float32)
    kv = kv + bkv_ref[...].astype(jnp.float32)                  # (N, 2*dpad)
    k = kv[:, :dpad].astype(cdt)                                # (N, dpad)
    v = kv[:, dpad:].astype(cdt)                                # (N, dpad)

    # Scores q @ k^T without materializing a transpose of k.
    s = lax.dot_general(q.astype(cdt), k, (((1,), (1,)), ((), ())),
                        preferred_element_type=jnp.float32)     # (tq, N) f32

    # Numerically-stable softmax in f32; reciprocal on the EUP slot.
    m = jnp.max(s, axis=-1, keepdims=True)
    e = jnp.exp(s - m)
    l = jnp.sum(e, axis=-1, keepdims=True)
    p = e * pl.reciprocal(l, approx=True)                       # (tq, N)

    # Weighted sum of values; probabilities cast back to MXU operand dtype.
    out = jnp.dot(p.astype(cdt), v, preferred_element_type=jnp.float32)
    o_ref[...] = out[None].astype(o_ref.dtype)                  # (1, tq, dpad)


def _pad_cols(a, to):
    pad = to - a.shape[-1]
    if pad == 0:
        return a
    return jnp.pad(a, [(0, 0)] * (a.ndim - 1) + [(0, pad)])


def self_attention(x, wq, bq, wk, bk, wv, bv, dk):
    """x: (B, N, dim); w*: (in, out) already transposed; b*: (out,)."""
    B, N, dim = x.shape
    dv = wv.shape[1]

    # Pad head dims to a multiple of 128: zero columns are inert for the math
    # (zero q/k padding contributes 0 to q.k^T; zero v columns stay zero) but
    # make every slice lane-aligned and the output store lane-dense.
    dpad = ((max(dk, dv) + 127) // 128) * 128
    scale = float(dk) ** -0.5

    wq_p = _pad_cols(wq, dpad)
    bq_p = _pad_cols(bq.reshape(1, -1), dpad)
    wkv = jnp.concatenate([_pad_cols(wk, dpad), _pad_cols(wv, dpad)], axis=1)
    bkv = jnp.concatenate([_pad_cols(bk.reshape(1, -1), dpad),
                           _pad_cols(bv.reshape(1, -1), dpad)], axis=1)

    # Query-row tiling: second parallel grid axis on top of batch.
    tq = next((c for c in (512, 256, 128) if N % c == 0), N)
    n_q = N // tq
    # TODO(synk): for very long N a flash-style kv tiling (online softmax)
    # should replace the full-sequence K/V block to bound VMEM on v7x.

    kernel = functools.partial(_self_attention_kernel, scale=scale, dpad=dpad)
    full = lambda shape: pl.BlockSpec(shape, lambda b, qi: (0, 0))

    out = pl.pallas_call(
        kernel,
        out_shape=jax.ShapeDtypeStruct((B, N, dpad), x.dtype),
        grid_spec=pltpu.PrefetchScalarGridSpec(
            num_scalar_prefetch=0,
            grid=(B, n_q),
            in_specs=[
                pl.BlockSpec((1, tq, dim), lambda b, qi: (b, qi, 0)),  # x (q rows)
                pl.BlockSpec((1, N, dim), lambda b, qi: (b, 0, 0)),    # x (kv rows)
                full(wq_p.shape),                                      # wq  (dim, dpad)
                full(bq_p.shape),                                      # bq  (1, dpad)
                full(wkv.shape),                                       # wkv (dim, 2*dpad)
                full(bkv.shape),                                       # bkv (1, 2*dpad)
            ],
            out_specs=pl.BlockSpec((1, tq, dpad), lambda b, qi: (b, qi, 0)),
        ),
        compiler_params=pltpu.CompilerParams(
            dimension_semantics=("parallel", "parallel")),
    )(x, x, wq_p, bq_p, wkv, bkv)

    return out[..., :dv]


def reference_self_attention(x, wq, bq, wk, bk, wv, bv, dk):
    """Pure-JAX reference mirroring the PyTorch module."""
    q = x @ wq + bq
    k = x @ wk + bk
    v = x @ wv + bv
    attn = (q @ jnp.swapaxes(k, -2, -1)) * (dk ** (-0.5))
    attn = jax.nn.softmax(attn, axis=-1)
    return attn @ v


if __name__ == "__main__":
    # Small shapes consistent with the module: x of shape (B, N, dim).
    B, N, dim = 2, 16, 32
    dk, dv = 32, 32

    key = jax.random.PRNGKey(0)
    kx, kwq, kbq, kwk, kbk, kwv, kbv = jax.random.split(key, 7)

    x = jax.random.uniform(kx, (B, N, dim), dtype=jnp.float32)

    # Deterministic Linear params. PyTorch Linear weight is (out, in);
    # we store the transpose (in, out) so the kernel does x @ W + b.
    bound = 1.0 / (dim ** 0.5)
    wq = jax.random.uniform(kwq, (dim, dk), minval=-bound, maxval=bound)
    bq = jax.random.uniform(kbq, (dk,), minval=-bound, maxval=bound)
    wk = jax.random.uniform(kwk, (dim, dk), minval=-bound, maxval=bound)
    bk = jax.random.uniform(kbk, (dk,), minval=-bound, maxval=bound)
    wv = jax.random.uniform(kwv, (dim, dv), minval=-bound, maxval=bound)
    bv = jax.random.uniform(kbv, (dv,), minval=-bound, maxval=bound)

    out = self_attention(x, wq, bq, wk, bk, wv, bv, dk)
    out = jax.block_until_ready(out)

    ref = reference_self_attention(x, wq, bq, wk, bk, wv, bv, dk)
    assert out.shape == (B, N, dv)
    # Tolerance loosened for the approximate (EUP) reciprocal in the softmax.
    assert jnp.allclose(out, ref, atol=1e-2, rtol=1e-2), "mismatch vs reference"

    print("KERNEL_OK")
</pallas_src>

<mosaic_0001>
module attributes {stable_mosaic.version = 11 : i64} {
  func.func @_self_attention_kernel(%arg0: i32, %arg1: i32, %arg2: memref<1x16x32xf32, #tpu.memory_space<vmem>>, %arg3: memref<1x16x32xf32, #tpu.memory_space<vmem>>, %arg4: memref<32x128xf32, #tpu.memory_space<vmem>>, %arg5: memref<1x128xf32, #tpu.memory_space<vmem>>, %arg6: memref<32x256xf32, #tpu.memory_space<vmem>>, %arg7: memref<1x256xf32, #tpu.memory_space<vmem>>, %arg8: memref<1x16x128xf32, #tpu.memory_space<vmem>>) attributes {dimension_semantics = [#tpu.dimension_semantics<parallel>, #tpu.dimension_semantics<parallel>], iteration_bounds = array<i64: 2, 1>, scalar_prefetch = 0 : i64, scratch_operands = 0 : i64, tpu.core_type = #tpu.core_type<tc>, window_params = [{transform_indices = @transform_0, window_bounds = array<i64: 1, 16, 32>}, {transform_indices = @transform_1, window_bounds = array<i64: 1, 16, 32>}, {pipeline_mode = #tpu.pipeline_mode<synchronous>, transform_indices = @transform_2, window_bounds = array<i64: 32, 128>}, {pipeline_mode = #tpu.pipeline_mode<synchronous>, transform_indices = @transform_3, window_bounds = array<i64: 1, 128>}, {pipeline_mode = #tpu.pipeline_mode<synchronous>, transform_indices = @transform_4, window_bounds = array<i64: 32, 256>}, {pipeline_mode = #tpu.pipeline_mode<synchronous>, transform_indices = @transform_5, window_bounds = array<i64: 1, 256>}, {transform_indices = @transform_6, window_bounds = array<i64: 1, 16, 128>}]} {
    %c0 = arith.constant 0 : index
    %c0_0 = arith.constant 0 : index
    %c0_1 = arith.constant 0 : index
    %0 = vector.load %arg2[%c0, %c0_0, %c0_1] : memref<1x16x32xf32, #tpu.memory_space<vmem>>, vector<1x16x32xf32>
    %1 = vector.shape_cast %0 : vector<1x16x32xf32> to vector<16x32xf32>
    %c0_2 = arith.constant 0 : index
    %c0_3 = arith.constant 0 : index
    %c0_4 = arith.constant 0 : index
    %2 = vector.load %arg3[%c0_2, %c0_3, %c0_4] : memref<1x16x32xf32, #tpu.memory_space<vmem>>, vector<1x16x32xf32>
    %3 = vector.shape_cast %2 : vector<1x16x32xf32> to vector<16x32xf32>
    %c0_5 = arith.constant 0 : index
    %c0_6 = arith.constant 0 : index
    %4 = vector.load %arg4[%c0_5, %c0_6] : memref<32x128xf32, #tpu.memory_space<vmem>>, vector<32x128xf32>
    %cst = arith.constant dense<0.000000e+00> : vector<16x128xf32>
    %5 = tpu.matmul %1, %4, %cst {dimension_numbers = #tpu.dot_dimension_numbers<[1], [0], [0], [1], [0, 0, 1, 1], [], []>} : vector<16x32xf32>, vector<32x128xf32>, vector<16x128xf32> -> vector<16x128xf32>
    %c0_7 = arith.constant 0 : index
    %c0_8 = arith.constant 0 : index
    %6 = vector.load %arg5[%c0_7, %c0_8] : memref<1x128xf32, #tpu.memory_space<vmem>>, vector<1x128xf32>
    %7 = vector.broadcast %6 : vector<1x128xf32> to vector<16x128xf32>
    %8 = arith.addf %5, %7 : vector<16x128xf32>
    %cst_9 = arith.constant 0.176776692 : f32
    %9 = vector.broadcast %cst_9 : f32 to vector<16x128xf32>
    %10 = arith.mulf %8, %9 : vector<16x128xf32>
    %c0_10 = arith.constant 0 : index
    %c0_11 = arith.constant 0 : index
    %11 = vector.load %arg6[%c0_10, %c0_11] : memref<32x256xf32, #tpu.memory_space<vmem>>, vector<32x256xf32>
    %cst_12 = arith.constant dense<0.000000e+00> : vector<16x256xf32>
    %12 = tpu.matmul %3, %11, %cst_12 {dimension_numbers = #tpu.dot_dimension_numbers<[1], [0], [0], [1], [0, 0, 1, 1], [], []>} : vector<16x32xf32>, vector<32x256xf32>, vector<16x256xf32> -> vector<16x256xf32>
    %c0_13 = arith.constant 0 : index
    %c0_14 = arith.constant 0 : index
    %13 = vector.load %arg7[%c0_13, %c0_14] : memref<1x256xf32, #tpu.memory_space<vmem>>, vector<1x256xf32>
    %14 = vector.broadcast %13 : vector<1x256xf32> to vector<16x256xf32>
    %15 = arith.addf %12, %14 : vector<16x256xf32>
    %16 = vector.extract_strided_slice %15 {offsets = [0, 0], sizes = [16, 128], strides = [1, 1]} : vector<16x256xf32> to vector<16x128xf32>
    %17 = vector.extract_strided_slice %15 {offsets = [0, 128], sizes = [16, 128], strides = [1, 1]} : vector<16x256xf32> to vector<16x128xf32>
    %cst_15 = arith.constant dense<0.000000e+00> : vector<16x16xf32>
    %18 = tpu.matmul %10, %16, %cst_15 {dimension_numbers = #tpu.dot_dimension_numbers<[1], [1], [0], [0], [0, 0, 1, 0], [], []>} : vector<16x128xf32>, vector<16x128xf32>, vector<16x16xf32> -> vector<16x16xf32>
    %cst_16 = arith.constant dense<0xFF800000> : vector<16xf32>
    %19 = vector.multi_reduction <maximumf>, %18, %cst_16 [1] : vector<16x16xf32> to vector<16xf32>
    %20 = vector.shape_cast %19 : vector<16xf32> to vector<16x1xf32>
    %21 = vector.broadcast %20 : vector<16x1xf32> to vector<16x16xf32>
    %22 = arith.subf %18, %21 : vector<16x16xf32>
    %23 = math.exp %22 : vector<16x16xf32>
    %cst_17 = arith.constant dense<0.000000e+00> : vector<16xf32>
    %24 = vector.multi_reduction <add>, %23, %cst_17 [1] : vector<16x16xf32> to vector<16xf32>
    %25 = vector.shape_cast %24 : vector<16xf32> to vector<16x1xf32>
    %26 = tpu.reciprocal %25 {approx = true} : vector<16x1xf32> -> vector<16x1xf32>
    %27 = vector.broadcast %26 : vector<16x1xf32> to vector<16x16xf32>
    %28 = arith.mulf %23, %27 : vector<16x16xf32>
    %cst_18 = arith.constant dense<0.000000e+00> : vector<16x128xf32>
    %29 = tpu.matmul %28, %17, %cst_18 {dimension_numbers = #tpu.dot_dimension_numbers<[1], [0], [0], [1], [0, 0, 1, 1], [], []>} : vector<16x16xf32>, vector<16x128xf32>, vector<16x128xf32> -> vector<16x128xf32>
    %30 = vector.shape_cast %29 : vector<16x128xf32> to vector<1x16x128xf32>
    %c0_19 = arith.constant 0 : index
    %c0_20 = arith.constant 0 : index
    %c0_21 = arith.constant 0 : index
    %31 = vector.load %arg8[%c0_19, %c0_20, %c0_21] : memref<1x16x128xf32, #tpu.memory_space<vmem>>, vector<1x16x128xf32>
    tpu.vector_store %arg8[%c0_19, %c0_20, %c0_21], %30 {strides = array<i32>} : memref<1x16x128xf32, #tpu.memory_space<vmem>>, vector<1x16x128xf32>,
    return
  }
  func.func @transform_0(%arg0: i32, %arg1: i32) -> (i32, i32, i32) {
    %c0_i32 = arith.constant 0 : i32
    %c0_i32_0 = arith.constant 0 : i32
    return %arg0, %arg1, %c0_i32 : i32, i32, i32
  }
  func.func @transform_1(%arg0: i32, %arg1: i32) -> (i32, i32, i32) {
    %c0_i32 = arith.constant 0 : i32
    %c0_i32_0 = arith.constant 0 : i32
    %c0_i32_1 = arith.constant 0 : i32
    return %arg0, %c0_i32, %c0_i32_0 : i32, i32, i32
  }
  func.func @transform_2(%arg0: i32, %arg1: i32) -> (i32, i32) {
    %c0_i32 = arith.constant 0 : i32
    %c0_i32_0 = arith.constant 0 : i32
    %c0_i32_1 = arith.constant 0 : i32
    return %c0_i32, %c0_i32_0 : i32, i32
  }
  func.func @transform_3(%arg0: i32, %arg1: i32) -> (i32, i32) {
    %c0_i32 = arith.constant 0 : i32
    %c0_i32_0 = arith.constant 0 : i32
    %c0_i32_1 = arith.constant 0 : i32
    return %c0_i32, %c0_i32_0 : i32, i32
  }
  func.func @transform_4(%arg0: i32, %arg1: i32) -> (i32, i32) {
    %c0_i32 = arith.constant 0 : i32
    %c0_i32_0 = arith.constant 0 : i32
    %c0_i32_1 = arith.constant 0 : i32
    return %c0_i32, %c0_i32_0 : i32, i32
  }
  func.func @transform_5(%arg0: i32, %arg1: i32) -> (i32, i32) {
    %c0_i32 = arith.constant 0 : i32
    %c0_i32_0 = arith.constant 0 : i32
    %c0_i32_1 = arith.constant 0 : i32
    return %c0_i32, %c0_i32_0 : i32, i32
  }
  func.func @transform_6(%arg0: i32, %arg1: i32) -> (i32, i32, i32) {
    %c0_i32 = arith.constant 0 : i32
    %c0_i32_0 = arith.constant 0 : i32
    return %arg0, %arg1, %c0_i32 : i32, i32, i32
  }
}

</mosaic_0001>

<bundles_post_ra>
// kernel: tpu_custom_call.1
= control target key start
LH: loop header
LB: loop body
LE: loop exit
PB: predicated region body
PF: predicated region fallthrough
CT: control target
= control target key end

     0   :  { %s1681_s0 = inlined_call_operand.hbm [shape: f32[2,16,32], index: 0, kind: input, shape index: {}]   ;;  %s1682_s1 = inlined_call_operand.hbm [shape: f32[2,16,32], index: 1, kind: input, shape index: {}]   ;;  %s1683_s2 = inlined_call_operand.hbm [shape: f32[32,128], index: 2, kind: input, shape index: {}]   ;;  %s1684_s3 = inlined_call_operand.vmem [shape: f32[1,128], index: 3, kind: input, shape index: {}]   ;;  %s1685_s4 = inlined_call_operand.hbm [shape: f32[32,256], index: 4, kind: input, shape index: {}]   ;;  %s1686_s5 = inlined_call_operand.vmem [shape: f32[1,256], index: 5, kind: input, shape index: {}]   ;;  %s1687_s6 = inlined_call_operand.hbm [shape: f32[2,16,128], index: 6, kind: output, shape index: {}]  }
   0x1   :  { %1698 = sst [smem:[#allocation20_spill]] %s1681_s0 }
   0x2   :  { %1699 = sst [smem:[#allocation21_spill]] %s1683_s2 }
   0x3   :  { %1700 = sst [smem:[#allocation22_spill]] %s1685_s4 }
   0x4   :  { %11 = vsyncpa [#allocation3], 0 }
   0x5   :  { %13 = vsyncpa [#allocation3 + $0x1], 0 }
   0x6   :  { %14 = vsyncpa [#allocation6], 0 }
   0x7   :  { %16 = vsyncpa [#allocation6 + $0x1], 0 }
   0x8   :  { %17 = vsyncpa [#allocation9], 0 }
   0x9   :  { %18 = vsyncpa [#allocation4], 0 }
   0xa   :  { %20 = vsyncpa [#allocation4 + $0x1], 0  ;;  %s1345_s21 = smov 0   ;;  %s1347_s22 = smov 0  }
   0xb   :  { %s1349_s23 = smov 0   ;;  %s1351_s24 = smov 0  }
   0xc   :  { %s1353_s25 = smov 0   ;;  %s1355_s26 = smov 0  }
   0xd LB: > { %1701 = sst [smem:[#allocation16_spill]] %s1284_s23  ;;  %s1376_s27 = sadd.s32 4294967295, %s1296_s26   ;;  %s1296_s26 = sphi %s1355_s26, %s26_s26   ;;  %s1292_s25 = sphi %s1353_s25, %s1728_s25   ;;  %s1288_s24 = sphi %s1351_s24, %s1727_s24   ;;  %s1284_s23 = sphi %s1349_s23, %s1726_s23   ;;  %s1280_s22 = sphi %s1347_s22, %s1730_s22   ;;  %s1276_s21 = sphi %s1345_s21, %s1729_s21  }
   0xe   : > { %1702 = sst [smem:[#allocation17_spill]] %s1292_s25  ;;  %s888_s28 = sadd.s32 4294967294, %s1296_s26  }
   0xf   : > { %p60_p0 = scmp.ne.s32.totalorder %s1280_s22, %s1276_s21  ;;  %p1688_p1 = scmp.eq.s32.totalorder %s1376_s27, 0 }
  0x10   : > { %p202_p3 = scmp.eq.s32.totalorder %s888_s28, 1  ;;  %p889_p5 = scmp.ge.s32.totalorder %s1296_s26, 1 }
  0x11   : > { %p1385_p4 = por %p1688_p1, %p60_p0  ;;  %p209_p7 = scmp.lt.s32.totalorder %s1296_s26, 3 }
  0x12   : > { %p1390_p6 = por %p202_p3, %p60_p0  ;;  %s1298_s8 = smov [#allocation7]  }
  0x13   : > { %s1703_s29 = scalar_select %p1385_p4, 1, 0 }
  0x14   : > { %s1704_s30 = scalar_select %p1390_p6, 1, 0 }
  0x15   : > { %p1395_p8 = pnand %p889_p5, %p209_p7  ;;  %s221_s9 = sshll.u32 %s1298_s8, 4  ;;  %s1399_s9 = int_to_ptr.vmem [resolvable:$true] %s221_s9 }
  0x16   : > { %s1299_s11 = smov [#allocation8]   ;;  %s1707_s2 = sld [smem:[#allocation21_spill]] }
  0x17   : > { %p997_p9 = pneg %p1395_p8  ;;  %s237_s12 = sshll.u32 %s1299_s11, 4  ;;  %s1410_s12 = int_to_ptr.vmem [resolvable:$true] %s237_s12 }
  0x19   : > { %p1406_p11 = pnand %p997_p9, %p1688_p1 }
  0x1b   : > { %p1088_p13 = pneg %p1406_p11 }
  0x1c   : > { %s1086_s15 = scalar_lea.hbm %s1707_s2, 512 }
  0x1d   : > { %p1087_p12 = scmp.ne.s32.totalorder %s1707_s2, %s1086_s15  ;;  %p1093_p5 = scmp.lt.u32.totalorder %s1086_s15, %s1707_s2 }
  0x1f   : > { %p1089_p0 = pnand %p1088_p13, %p1087_p12 }
  0x21   : > { %p1090_p3 = pneg %p1089_p0 }
  0x23   : > { %p1095_p7 = pnand %p1093_p5, %p1090_p3 }
  0x25   : > { %1098 = shalt.err (!%p1095_p7)
}
  0x26   : > { %s1099_s20 = scalar_lea.vmem %s1399_s9, 512  ;;  %p1107_p2 = scmp.lt.s32.totalorder %s1399_s9, %s1399_s9 }
  0x27   : > { %p1100_p9 = scmp.ne.s32.totalorder %s1399_s9, %s1099_s20  ;;  %p1108_p12 = scmp.lt.s32.totalorder %s1099_s20, %s1099_s20 }
  0x29   : > { %p1102_p10 = pnand %p1100_p9, %p1088_p13  ;;  %p1109_p0 = por %p1108_p12, %p1107_p2 }
  0x2b   : > { %p1103_p1 = pneg %p1102_p10 }
  0x2d   : > { %p1110_p6 = pnand %p1109_p0, %p1103_p1 }
  0x2f   : > { %1113 = shalt.err (!%p1110_p6)
}
  0x30   : > { %s1689_s28 = smov 128   ;;  %s1691_s8 = smov 8  }
  0x31   : > { %1000 = dma.hbm_to_vmem [thread:$0]  (!%p1406_p11), %s1707_s2, 512, %s1399_s9, [#allocation6], %s1689_s28, %s1689_s28, %s1691_s8  }
  0x32   : > { %s1708_s4 = sld [smem:[#allocation22_spill]] }
  0x38   : > { %s1114_s16 = scalar_lea.hbm %s1708_s4, 1024 }
  0x39   : > { %p1115_p1 = scmp.ne.s32.totalorder %s1708_s4, %s1114_s16  ;;  %p1121_p10 = scmp.lt.u32.totalorder %s1114_s16, %s1708_s4 }
  0x3b   : > { %p1117_p2 = pnand %p1115_p1, %p1088_p13 }
  0x3d   : > { %p1118_p6 = pneg %p1117_p2 }
  0x3f   : > { %p1123_p3 = pnand %p1121_p10, %p1118_p6 }
  0x41   : > { %1126 = shalt.err (!%p1123_p3)
}
  0x42   : > { %s1127_s9 = scalar_lea.vmem %s1410_s12, 1024  ;;  %p1135_p12 = scmp.lt.s32.totalorder %s1410_s12, %s1410_s12 }
  0x43   : > { %p1128_p5 = scmp.ne.s32.totalorder %s1410_s12, %s1127_s9  ;;  %p1136_p0 = scmp.lt.s32.totalorder %s1127_s9, %s1127_s9 }
  0x45   : > { %p1130_p7 = pnand %p1128_p5, %p1088_p13  ;;  %p1137_p1 = por %p1136_p0, %p1135_p12 }
  0x47   : > { %p1131_p9 = pneg %p1130_p7 }
  0x49   : > { %p1138_p2 = pnand %p1137_p1, %p1131_p9 }
  0x4b   : > { %1141 = shalt.err (!%p1138_p2)
}
  0x4c   : > { %s1302_s11 = smov 256   ;;  %s1303_s13 = smov 16  }
  0x4d   : > { %1003 = dma.hbm_to_vmem [thread:$0]  (!%p1406_p11), %s1708_s4, 1024, %s1410_s12, [#allocation9], %s1302_s11, %s1302_s11, %s1303_s13  }
  0x4e   : > { %s38_s16 = sadd.s32 1, %s1292_s25  ;;  %s47_s17 = sadd.s32 1, %s1284_s23 }
  0x4f   : > { %p40_p13 = scmp.ge.s32.totalorder %s38_s16, 2  ;;  %p54_p6 = scmp.ne.s32.totalorder %s1284_s23, %s1280_s22 }
  0x50   : > { %p55_p10 = scmp.eq.s32.totalorder %s1296_s26, 0  ;;  %p1017_p3 = scmp.lt.s32.totalorder %s1296_s26, 2 }
  0x51   : > { %s1732_s16 = smov (%p40_p13, %s38_s16), 0  ;;  %p1710_p7 = scmp.eq.s32.totalorder %s1376_s27, 1 }
  0x52   : > { %1709 = sst [smem:[#allocation18_spill]] %s1732_s16  ;;  %p56_p5 = por %p55_p10, %p54_p6 }
  0x53   : > { %p1477_p9 = por %p1710_p7, %p54_p6  ;;  %s42_s10 = ssub.s32 %s1292_s25, %s1732_s16 }
  0x54   : > { %s254_s19 = sand.u32 1, %s1284_s23   ;;  %p45_p12 = scmp.eq.s32.totalorder %s42_s10, 0 }
  0x55   : > { %s1711_s18 = scalar_select %p1477_p9, 1, 0 }
  0x56   : > { %s1484_s12 = sshll.u32 %s254_s19, 4  ;;  %s917_s20 = sshll.u32 %s1292_s25, 8 }
  0x57   : > { %s1488_s9 = scalar_select %p45_p12, %s1284_s23, %s47_s17  }
  0x58   : > { %s1713_s0 = sld [smem:[#allocation20_spill]]  ;;  %s258_s15 = scalar_lea.vmem [#allocation2], %s1484_s12 }
  0x59   : > { %1712 = sst [smem:[#allocation19_spill]] %s1488_s9  ;;  %s267_s28 = sshll.u32 %s258_s15, 4  ;;  %s1502_s28 = int_to_ptr.vmem [resolvable:$true] %s267_s28 }
  0x5a   : > { %p1498_p11 = pnand %p1017_p3, %p56_p5  ;;  %s1507_s11 = scalar_lea.hbm %s1682_s1, %s917_s20 }
  0x5b   : > { %s1509_s13 = scalar_lea.sflag [#allocation3], %s254_s19 }
  0x5c   : > { %p1144_p1 = pneg %p1498_p11 }
  0x5e   : > { %s1493_s14 = scalar_lea.hbm %s1713_s0, %s917_s20  ;;  %s1147_s16 = scalar_lea.hbm %s1713_s0, 512 }
  0x5f   : > { %s1142_s2 = scalar_lea.hbm %s1493_s14, 256  ;;  %p1148_p6 = scmp.lt.u32.totalorder %s1493_s14, %s1713_s0 }
  0x60   : > { %p1143_p0 = scmp.ne.s32.totalorder %s1493_s14, %s1142_s2  ;;  %p1149_p10 = scmp.lt.u32.totalorder %s1147_s16, %s1142_s2 }
  0x61   : > { %p1151_p5 = scmp.lt.u32.totalorder %s1142_s2, %s1493_s14 }
  0x62   : > { %p1145_p2 = pnand %p1144_p1, %p1143_p0  ;;  %p1150_p3 = por %p1149_p10, %p1148_p6 }
  0x64   : > { %p1146_p13 = pneg %p1145_p2  ;;  %p1152_p7 = por %p1151_p5, %p1150_p3 }
  0x66   : > { %p1153_p12 = pnand %p1152_p7, %p1146_p13 }
  0x68   : > { %1156 = shalt.err (!%p1153_p12)
}
  0x69   : > { %s1157_s8 = scalar_lea.vmem %s1502_s28, 256  ;;  %s1304_s4 = smov [#allocation2]  }
  0x6a   : > { %p1158_p0 = scmp.ne.s32.totalorder %s1502_s28, %s1157_s8  ;;  %s1162_s19 = sshll.u32 %s1304_s4, 4  ;;  %s1163_s19 = int_to_ptr.vmem [resolvable:$false] %s1162_s19 }
  0x6b   : > { %s1164_s25 = scalar_lea.vmem %s1163_s19, 512  ;;  %p1165_p4 = scmp.lt.s32.totalorder %s1502_s28, %s1163_s19 }
  0x6c   : > { %p1160_p2 = pnand %p1158_p0, %p1144_p1  ;;  %p1166_p6 = scmp.lt.s32.totalorder %s1164_s25, %s1157_s8 }
  0x6e   : > { %p1161_p9 = pneg %p1160_p2  ;;  %p1167_p10 = por %p1166_p6, %p1165_p4 }
  0x70   : > { %p1168_p3 = pnand %p1167_p10, %p1161_p9 }
  0x72   : > { %1171 = shalt.err (!%p1168_p3)
}
  0x73   : > { %s1715_s2 = smov 8   ;;  %s1716_s16 = smov 128  }
  0x74   : > { %1007 = dma.hbm_to_vmem [thread:$0]  (!%p1498_p11), %s1493_s14, 256, %s1502_s28, %s1509_s13, %s1716_s16, %s1716_s16, %s1715_s2  }
  0x75   : > { %s281_s20 = scalar_lea.vmem [#allocation5], %s1484_s12  ;;  %s277_s17 = sand.u32 1, %s1296_s26  }
  0x76   : > { %s288_s9 = sshll.u32 %s281_s20, 4  ;;  %s1544_s15 = scalar_lea.sflag [#allocation6], %s277_s17  ;;  %s1542_s9 = int_to_ptr.vmem [resolvable:$true] %s288_s9 }
  0x77   : > { %s1172_s8 = scalar_lea.hbm %s1507_s11, 256  ;;  %s1177_s25 = scalar_lea.hbm %s1682_s1, 512 }
  0x78   : > { %p1173_p4 = scmp.ne.s32.totalorder %s1507_s11, %s1172_s8  ;;  %p1178_p5 = scmp.lt.u32.totalorder %s1507_s11, %s1682_s1 }
  0x79   : > { %p1179_p7 = scmp.lt.u32.totalorder %s1177_s25, %s1172_s8  ;;  %p1181_p0 = scmp.lt.u32.totalorder %s1172_s8, %s1507_s11 }
  0x7a   : > { %p1175_p9 = pnand %p1173_p4, %p1144_p1 }
  0x7b   : > { %p1180_p12 = por %p1179_p7, %p1178_p5 }
  0x7c   : > { %p1176_p13 = pneg %p1175_p9 }
  0x7d   : > { %p1182_p2 = por %p1181_p0, %p1180_p12 }
  0x7f   : > { %p1183_p6 = pnand %p1182_p2, %p1176_p13 }
  0x81   : > { %1186 = shalt.err (!%p1183_p6)
}
  0x82   : > { %s1187_s28 = scalar_lea.vmem %s1542_s9, 256  ;;  %s1305_s12 = smov [#allocation5]  }
  0x83   : > { %p1188_p10 = scmp.ne.s32.totalorder %s1542_s9, %s1187_s28  ;;  %s1192_s14 = sshll.u32 %s1305_s12, 4  ;;  %s1193_s14 = int_to_ptr.vmem [resolvable:$false] %s1192_s14 }
  0x84   : > { %s1194_s0 = scalar_lea.vmem %s1193_s14, 512  ;;  %p1195_p9 = scmp.lt.s32.totalorder %s1542_s9, %s1193_s14 }
  0x85   : > { %p1190_p3 = pnand %p1188_p10, %p1144_p1  ;;  %p1196_p5 = scmp.lt.s32.totalorder %s1194_s0, %s1187_s28 }
  0x87   : > { %p1191_p4 = pneg %p1190_p3  ;;  %p1197_p7 = por %p1196_p5, %p1195_p9 }
  0x89   : > { %p1198_p12 = pnand %p1197_p7, %p1191_p4 }
  0x8b   : > { %1201 = shalt.err (!%p1198_p12)
}
  0x8c   : > { %1010 = dma.hbm_to_vmem [thread:$0]  (!%p1498_p11), %s1507_s11, 256, %s1542_s9, %s1544_s15, %s1716_s16, %s1716_s16, %s1715_s2  }
  0x8d   : > { %300 = sbr.rel (%p1395_p8) target bundleno = 1156 (0x484), region = 44  ;;  %s1576_s23 = sand.u32 (!%p1395_p8), 1, %s1280_s22  }
  0x8e   : > { %s1579_s13 = sshll.u32 (!%p1395_p8), %s1576_s23, 4  ;;  %s303_s10 = scalar_lea.sflag (!%p1395_p8), [#allocation3], %s1576_s23 }
  0x8f   : > { %s306_s20 = scalar_lea.vmem (!%p1395_p8), [#allocation2], %s1579_s13  ;;  %p1717_p1 = scmp.ne.s32.totalorder (!%p1395_p8), %s1703_s29, 0 }
  0x94   : > { %1255 = dma.done.wait (%p1717_p1), %s303_s10, 256  }
  0x95   : > { %1257 = vsyncadd (%p1717_p1), %s303_s10, 4294967040  ;;  %s311_s7 = sand.u32 1, %s1376_s27   ;;  %s315_s2 = scalar_lea.vmem [#allocation5], %s1579_s13 }
  0x96   : > { %s312_s11 = scalar_lea.sflag [#allocation6], %s311_s7 }
  0x97   : > { %1259 = dma.done.wait (%p1717_p1), %s312_s11, 256  }
  0x98   : > { %1261 = vsyncadd (%p1717_p1), %s312_s11, 4294967040  ;;  %p1718_p8 = scmp.eq.s32.totalorder %s1376_s27, 0 }
  0x9a   : > { %1263 = dma.done.wait (%p1718_p8), [#allocation6], 512   ;;  %p1719_p11 = pmov %p1718_p8 }
  0x9b   : > { %p1720_p13 = pmov %p1718_p8 }
  0x9c   : > { %1265 = vsyncadd (%p1719_p11), [#allocation6], 4294966784 }
  0x9d   : > { %1267 = dma.done.wait (%p1720_p13), [#allocation9], 1024   ;;  %p1721_p0 = pmov %p1718_p8 }
  0x9e   : > { %v1306_v0 = vmov 0.0   ;;  %v459_v1 = vld [vmem:[#allocation8 + $0x8] sm:$0xff]  ;;  %v461_v2 = vld [vmem:[#allocation8 + $0x18] sm:$0xff]  ;;  %v458_v3 = vld [vmem:[#allocation8] sm:$0xff]  ;;  %vm374_vm0 = vcmask 261120   ;;  %v468_v23 = vlaneseq  ;;  %vm636_vm1 = vcmask 130048  }
  0x9f   : > { %1269 = vsyncadd (%p1721_p0), [#allocation9], 4294966272  ;;  %548 = vmatprep.mubr.f32.mxu1 %v1306_v0  ;;  %v967_v4 = vpack.c.bf16 %v461_v2, %v459_v1  ;;  %v460_v5 = vld [vmem:[#allocation8 + $0x10] sm:$0xff]  ;;  %v463_v6 = vld [vmem:[#allocation8 + $0x28] sm:$0xff]  ;;  %s356_s17 = scalar_lea.vmem [#allocation10], %s1579_s13  ;;  %s919_s8 = sshll.u32 %s1288_s24, 8 }
  0xa0   : > { %v465_v7 = vld [vmem:[#allocation8 + $0x38] sm:$0xff]  ;;  %v969_v8 = vpack.c.bf16 %v460_v5, %v458_v3  ;;  %v462_v10 = vld [vmem:[#allocation8 + $0x20] sm:$0xff]  ;;  %v464_v11 = vld [vmem:[#allocation8 + $0x30] sm:$0xff]  ;;  %v469_v24 = vshrl.u32 %v468_v23, 7  ;;  %s758_s15 = sshll.u32 %s356_s17, 4  ;;  %s1632_s25 = scalar_lea.hbm %s1687_s6, %s919_s8  ;;  %s1627_s15 = int_to_ptr.vmem [resolvable:$true] %s758_s15 }
  0xa1   : > { %v971_v9 = vpack.c.bf16 %v465_v7, %v463_v6  ;;  %968 = vmatprep.subr.bf16.mxu1 %v967_v4  ;;  %v363_v12 = vld [vmem:[#allocation7] sm:$0xff]  ;;  %v364_v13 = vld [vmem:[#allocation7 + $0x8] sm:$0xff]  ;;  %v973_v14 = vpack.c.bf16 %v464_v11, %v462_v10  ;;  %v365_v16 = vld [vmem:[#allocation7 + $0x10] sm:$0xff]  ;;  %s743_s28 = scalar_lea.sflag [#allocation4], %s1576_s23  ;;  %s1202_s12 = scalar_lea.vmem %s1627_s15, 256 }
  0xa2   : > { %970 = vmatpush1.bf16.msra.mxu1 %v969_v8  ;;  %v959_v15 = vpack.c.bf16 %v364_v13, %v363_v12  ;;  %v366_v17 = vld [vmem:[#allocation7 + $0x18] sm:$0xff]  ;;  %v359_v18 = vld [vmem:[%s306_s20] sm:$0xff]  ;;  %v470_v25 = vsub.s32 0, %v469_v24  ;;  %v474_v27 = vsub.s32 1, %v469_v24  ;;  %p1203_p2 = scmp.ne.s32.totalorder %s1627_s15, %s1202_s12  ;;  %p1722_p6 = scmp.ne.s32.totalorder %s1711_s18, 0 }
  0xa3   : > { %972 = vmatprep.subr.bf16.mxu1 %v971_v9  ;;  %v963_v19 = vpack.c.bf16 %v366_v17, %v365_v16  ;;  %942 = vmatprep.mubr.msk.f32.mxu0 %vm374_vm0, %v359_v18  ;;  %v361_v20 = vld [vmem:[%s315_s2] sm:$0xff]  ;;  %v360_v21 = vld [vmem:[%s306_s20 + $0x8] sm:$0xff]  ;;  %s1307_s24 = smov [#allocation10]  }
  0xa4   : > { %960 = vmatprep.subr.bf16.mxu0 %v959_v15  ;;  %v362_v22 = vld [vmem:[%s315_s2 + $0x8] sm:$0xff]  ;;  %v466_v26 = vld [vmem:[%s1686_s5] sm:$0x3]  ;;  %p1204_p10 = pnand %p1203_p2, %p1722_p6  ;;  %s1206_s14 = sshll.u32 %s1307_s24, 4  ;;  %s1207_s14 = int_to_ptr.vmem [resolvable:$false] %s1206_s14 }
  0xa5   : > { %962 = vmatpush3.bf16.msra.mxu0 %v959_v15  ;;  %v471_v29 = vrot.slane %v466_v26, %v470_v25  ;;  %v475_v31 = vrot.slane %v466_v26, %v474_v27  ;;  %v905_v32 = vld [vmem:[%s1684_s3] ss:$0 sm:$0xff]  ;;  %s1208_s0 = scalar_lea.vmem %s1207_s14, 512  ;;  %p1209_p4 = scmp.lt.s32.totalorder %s1627_s15, %s1207_s14 }
  0xa6   : > { %974 = vmatpush1.bf16.msra.mxu1 %v973_v14  ;;  %964 = vmatprep.subr.bf16.mxu0 %v963_v19  ;;  %p1205_p3 = pneg %p1204_p10  ;;  %p1210_p9 = scmp.lt.s32.totalorder %s1208_s0, %s1202_s12 }
  0xa8   : > { %p1211_p5 = por %p1210_p9, %p1209_p4 }
  0xa9   : > { %908 = vmatmul.mubr.msk.f32.vlgmr.msra.gmra.mrb[0].mxu1 %vm374_vm0, %v361_v20  ;;  %966 = vmatpush3.bf16.msra.mxu0 %v963_v19 }
  0xaa   : > { %554 = vmatprep.mubr.f32.mxu1 %v1306_v0  ;;  %p1212_p7 = pnand %p1211_p5, %p1205_p3 }
  0xac   : > { %943 = vmatmul.mubr.msk.f32.vlgmr.msra.gmra.mrb[0].mxu0 %vm374_vm0, %v360_v21 }
  0xad   : > { %909 = vmatmul.mubr.msk.f32.gmra.mrb[2].mxu1 %vm374_vm0, %v362_v22 }
 0x17c   : > { %v550_v28 = vpop.f32.mrb[0].mxu1 }
 0x17d   : > { %v552_v30 = vpop.f32.mrb[1].mxu1  ;;  %v551_v36 = vadd.f32 %v550_v28, %v471_v29 }
 0x17e   : > { %v553_v40 = vadd.f32 %v552_v30, %v475_v31 }
 0x17f   : > { %v944_v33 = vpop.f32.mrb[0].mxu0 }
 0x180   : > { %v556_v34 = vpop.f32.mrb[2].mxu1  ;;  %v447_v35 = vpop.f32.mrb[1].mxu0  ;;  %v453_v45 = vadd.f32 %v944_v33, %v905_v32 }
 0x181   : > { %v557_v37 = vadd.f32 %v556_v34, %v471_v29  ;;  %v558_v38 = vpop.f32.mrb[3].mxu1  ;;  %v448_v39 = vadd.f32 %v905_v32, %v447_v35 }
 0x182   : > { %v559_v41 = vadd.f32 %v558_v38, %v475_v31  ;;  %v457_v46 = vmul.f32 0.17677669, %v453_v45 }
 0x183   : > { %v975_v42 = vpack.c.bf16 %v557_v37, %v551_v36  ;;  %v456_v43 = vmul.f32 0.17677669, %v448_v39 }
 0x184   : > { %v979_v44 = vpack.c.bf16 %v559_v41, %v553_v40 }
 0x185   : > { %976 = vmatprep.subr.bf16.mxu0 %v975_v42  ;;  %949 = vmatprep.mubr.f32.mxu0 %v456_v43 }
 0x186   : > { %978 = vmatpush3.bf16.xpose.msra.mxu0 %v975_v42  ;;  %980 = vmatprep.subr.bf16.mxu1 %v979_v44 }
 0x187   : > { %982 = vmatpush3.bf16.msra.mxu1 %v979_v44 }
 0x18d   : > { %950 = vmatmul.mubr.f32.vlgmr.msra.gmra.mrb[2].mxu0 %v457_v46 }
 0x260   : > { %v951_v47 = vpop.f32.mrb[2].mxu0 }
 0x261   : > { %v627_v48 = vpop.f32.mrb[3].mxu0  ;;  %v640_v50 = vsel %vm636_vm1, %v951_v47, -inf }
 0x262   : > { %v637_v49 = vsel %vm636_vm1, %v627_v48, -inf }
 0x263   : > { %638 = vmax.xlane.f32.xlu0 %v637_v49 }
 0x267   : > { %641 = vmax.xlane.f32.xlu0 %v640_v50 }
 0x2f0   : > { %v639_v51 = vpop.xlane.xlu0 %638 }
 0x2f1   : > { %v643_v52 = vsub.f32 %v627_v48, %v639_v51 }
 0x2f3   : > { %v645_v53 = vmul.f32 1.442695, %v643_v52 }
 0x2f4   : > { %v642_v54 = vpop.xlane.xlu0 %641 }
 0x2f5   : > { %1078 = vpow2.f32 %v645_v53  ;;  %v644_v55 = vsub.f32 %v951_v47, %v642_v54 }
 0x2f7   : > { %v647_v56 = vmul.f32 1.442695, %v644_v55 }
 0x2f9   : > { %1080 = vpow2.f32 %v647_v56 }
 0x2ff   : > { %v1079_v57 = vpop.eup %1078 }
 0x300   : > { %v649_v58 = vsel %vm636_vm1, %v1079_v57, 0.0 }
 0x301   : > { %650 = vadd.xlane.f32.xlu1 %v649_v58 }
 0x303   : > { %v1081_v59 = vpop.eup %1080 }
 0x304   : > { %v652_v60 = vsel %vm636_vm1, %v1081_v59, 0.0 }
 0x305   : > { %653 = vadd.xlane.f32.xlu1 %v652_v60 }
 0x38e   : > { %v651_v61 = vpop.xlane.xlu1 %650 }
 0x38f   : > { %1082 = vrcp.f32 %v651_v61 }
 0x392   : > { %v654_v62 = vpop.xlane.xlu1 %653 }
 0x393   : > { %1084 = vrcp.f32 %v654_v62 }
 0x399   : > { %v1083_v63 = vpop.eup %1082 }
 0x39a   : > { %v657_v0 = vmul.f32 %v1083_v63, %v1079_v57 }
 0x39c   : > { %956 = vmatprep.mubr.msk.f32.mxu1 %vm636_vm1, %v657_v0 }
 0x39d   : > { %v1085_v1 = vpop.eup %1084 }
 0x39e   : > { %v658_v2 = vmul.f32 %v1085_v1, %v1081_v59 }
 0x3a0   : > { %957 = vmatmul.mubr.msk.f32.vlgmr.msra.gmra.mrb[4].mxu1 %vm636_vm1, %v658_v2 }
 0x473   : > { %v958_v3 = vpop.f32.mrb[4].mxu1 }
 0x474   : > { %741 = vst [vmem:[%s356_s17 + $0x8] sm:$0xff] %v958_v3  ;;  %v731_v4 = vpop.f32.mrb[5].mxu1 }
 0x475   : > { %740 = vst [vmem:[%s356_s17] sm:$0xff] %v731_v4 }
 0x476   : > { %1215 = shalt.err (!%p1212_p7)
}
 0x477   : > { %s1216_s13 = scalar_lea.hbm %s1632_s25, 256  ;;  %s1220_s7 = scalar_lea.hbm %s1687_s6, 512 }
 0x478   : > { %p1217_p12 = scmp.ne.s32.totalorder %s1632_s25, %s1216_s13  ;;  %p1221_p11 = scmp.lt.u32.totalorder %s1632_s25, %s1687_s6 }
 0x479   : > { %p1222_p13 = scmp.lt.u32.totalorder %s1220_s7, %s1216_s13  ;;  %p1224_p2 = scmp.lt.u32.totalorder %s1216_s13, %s1632_s25 }
 0x47a   : > { %p1218_p1 = pnand %p1217_p12, %p1722_p6 }
 0x47b   : > { %p1223_p0 = por %p1222_p13, %p1221_p11 }
 0x47c   : > { %p1219_p8 = pneg %p1218_p1 }
 0x47d   : > { %p1225_p10 = por %p1224_p2, %p1223_p0 }
 0x47f   : > { %p1226_p3 = pnand %p1225_p10, %p1219_p8 }
 0x481   : > { %1229 = shalt.err (!%p1226_p3)
}
 0x482   : > { %s1308_s27 = smov 128   ;;  %s1309_s29 = smov 8  }
 0x483   : > { %995 = dma.vmem_to_hbm [thread:$0]  (%p1722_p6), %s1627_s15, 256, %s1632_s25, %s743_s28, %s1308_s27, %s1308_s27, %s1309_s29  }
 0x484 PF: > { %s773_s16 = sand.u32 1, %s1276_s21   ;;  %p1723_p4 = scmp.ne.s32.totalorder %s1704_s30, 0 }
 0x485   : > { %p1724_p9 = scmp.ge.s32.totalorder %s1296_s26, 2  ;;  %s774_s9 = scalar_lea.sflag [#allocation4], %s773_s16 }
 0x487   : > { %p1012_p5 = pnand %p1724_p9, %p1723_p4 }
 0x489   : > { %1271 = dma.done.wait (!%p1012_p5), %s774_s9, 256  }
 0x48a   : > { %1273 = vsyncadd (!%p1012_p5), %s774_s9, 4294967040  ;;  %s26_s26 = sadd.s32 1, %s1296_s26   ;;  %s1725_s17 = sld [smem:[#allocation16_spill]] }
 0x48b   : > { %p23_p7 = scmp.ge.s32.totalorder %s26_s26, 4   ;;  %s1726_s23 = sld [smem:[#allocation19_spill]] }
 0x48c   : > { %s1727_s24 = sld [smem:[#allocation17_spill]]  ;;  %s1728_s25 = sld [smem:[#allocation18_spill]] }
 0x48d   : > { %s1729_s21 = smov %s1280_s22  ;;  %25 = sbr.rel (!%p23_p7) target bundleno = 13 (0xd), region = 110 }
 0x490   : > { %s1730_s22 = smov %s1725_s17 }
 0x494   :  { %779 = vsyncpa [#allocation3], 1 }
 0x495   :  { %781 = vsyncpa [#allocation3 + $0x1], 1 }
 0x496   :  { %782 = vsyncpa [#allocation6], 1 }
 0x497   :  { %784 = vsyncpa [#allocation6 + $0x1], 1 }
 0x498   :  { %785 = vsyncpa [#allocation9], 1 }
 0x499   :  { %786 = vsyncpa [#allocation4], 1 }
 0x49a   :  { %788 = vsyncpa [#allocation4 + $0x1], 1 }

</bundles_post_ra>
